<compile_context>
chip_gen: v7x
topology: tpu7x:2x2x1
jax: 0.10.0
libtpu: 0.0.40
codegen_flags: <defaults>
</compile_context>

<pallas_src>
import jax
import jax.numpy as jnp
from jax.experimental import pallas as pl
from jax.experimental.pallas import tpu as pltpu


# ~16 MiB for the double-buffered in/out tiles; leaves headroom for in-kernel
# temporaries under the scoped-VMEM limit requested below.
_TILE_BUDGET_BYTES = 16 * 1024 * 1024
_VMEM_LIMIT_BYTES = 48 * 1024 * 1024


def _mb_std_concat_kernel(x_ref, o_ref):
    # x_ref: (TB, C, THW), o_ref: (TB, C+1, THW)
    C = x_ref.shape[1]
    x = x_ref[...]                                # single tile load
    xf = x.astype(jnp.float32)                    # no-op for f32 inputs

    # Two-pass unbiased variance over the channel axis (f32 accumulation).
    mean = jnp.sum(xf, axis=1, keepdims=True) * jnp.float32(1.0 / C)
    d = xf - mean
    var = jnp.sum(d * d, axis=1, keepdims=True) * jnp.float32(1.0 / (C - 1))
    var = jnp.maximum(var, jnp.float32(0.0))      # guard f32 cancellation
    std = jnp.sqrt(var)                           # EUP slot; effectively free

    o_ref[:, :C] = x
    o_ref[:, C:] = std.astype(o_ref.dtype)


def _choose_tiling(N, C, HW, itemsize, budget_bytes):
    """Pick (TB, THW): batch elements per step and spatial chunk per step."""

    def fits(tb, thw):
        # double-buffered input (C channels) + output (C+1 channels) tiles
        return 2 * tb * (2 * C + 1) * thw * itemsize <= budget_bytes

    # Preferred: fold batch elements, keep the full spatial extent per step.
    fitting = [tb for tb in range(N, 0, -1) if N % tb == 0 and fits(tb, HW)]
    if fitting:
        # Prefer the largest TB that still leaves >= 2 grid steps (lets v7x
        # shard across its 2 TensorCores); otherwise the largest fitting TB.
        for tb in fitting:
            if N // tb >= 2:
                return tb, HW
        return fitting[0], HW

    # A single batch element doesn't fit: split spatial into 128-aligned
    # chunks (exact -- the channel reduction is independent per position).
    if HW % 128 == 0:
        n_lanes = HW // 128
        for chunks in range(2, n_lanes + 1):        # largest chunk first
            if n_lanes % chunks == 0 and fits(1, HW // chunks):
                return 1, HW // chunks
        return 1, 128                               # smallest aligned chunk
    # HW not 128-aligned: fall back to the full spatial extent (correct, but
    # relies on the raised VMEM limit).
    return 1, HW


def minibatch_std_concat(x):
    N, C, H, W = x.shape
    HW = H * W
    itemsize = jnp.dtype(x.dtype).itemsize

    tb, thw = _choose_tiling(N, C, HW, itemsize, _TILE_BUDGET_BYTES)
    grid = (N // tb, HW // thw)

    x2 = x.reshape(N, C, HW)  # lane-dense view: last dim = H*W

    out = pl.pallas_call(
        _mb_std_concat_kernel,
        out_shape=jax.ShapeDtypeStruct((N, C + 1, HW), x.dtype),
        grid_spec=pltpu.PrefetchScalarGridSpec(
            num_scalar_prefetch=0,
            grid=grid,
            in_specs=[pl.BlockSpec((tb, C, thw), lambda b, s: (b, 0, s))],
            out_specs=pl.BlockSpec((tb, C + 1, thw), lambda b, s: (b, 0, s)),
        ),
        compiler_params=pltpu.CompilerParams(
            dimension_semantics=("parallel", "parallel"),
            vmem_limit_bytes=_VMEM_LIMIT_BYTES,
        ),
    )(x2)

    return out.reshape(N, C + 1, H, W)


if __name__ == "__main__":
    key = jax.random.PRNGKey(0)
    x = jax.random.normal(key, (2, 4, 16, 16), dtype=jnp.float32)

    out = minibatch_std_concat(x)
    out = jax.block_until_ready(out)

    # Reference in plain JAX (unbiased std over channel dim, then concat).
    mean = jnp.mean(x, axis=1, keepdims=True)
    ref_std = jnp.sqrt(
        jnp.sum((x - mean) ** 2, axis=1, keepdims=True) / (x.shape[1] - 1)
    )
    ref = jnp.concatenate([x, ref_std], axis=1)

    assert out.shape == (2, 5, 16, 16)
    assert jnp.allclose(out, ref, atol=1e-4, rtol=1e-4), (
        float(jnp.max(jnp.abs(out - ref)))
    )

    print("KERNEL_OK")
</pallas_src>

<mosaic_0001>
module attributes {stable_mosaic.version = 11 : i64} {
  func.func @_mb_std_concat_kernel(%arg0: i32, %arg1: i32, %arg2: memref<1x4x256xf32, #tpu.memory_space<vmem>>, %arg3: memref<1x5x256xf32, #tpu.memory_space<vmem>>) attributes {dimension_semantics = [#tpu.dimension_semantics<parallel>, #tpu.dimension_semantics<parallel>], iteration_bounds = array<i64: 2, 1>, scalar_prefetch = 0 : i64, scratch_operands = 0 : i64, tpu.core_type = #tpu.core_type<tc>, window_params = [{transform_indices = @transform_0, window_bounds = array<i64: 1, 4, 256>}, {transform_indices = @transform_1, window_bounds = array<i64: 1, 5, 256>}]} {
    %c0 = arith.constant 0 : index
    %c0_0 = arith.constant 0 : index
    %c0_1 = arith.constant 0 : index
    %0 = vector.load %arg2[%c0, %c0_0, %c0_1] : memref<1x4x256xf32, #tpu.memory_space<vmem>>, vector<1x4x256xf32>
    %cst = arith.constant dense<0.000000e+00> : vector<1x256xf32>
    %1 = vector.multi_reduction <add>, %0, %cst [1] : vector<1x4x256xf32> to vector<1x256xf32>
    %2 = vector.shape_cast %1 : vector<1x256xf32> to vector<1x1x256xf32>
    %cst_2 = arith.constant 2.500000e-01 : f32
    %3 = vector.broadcast %cst_2 : f32 to vector<1x1x256xf32>
    %4 = arith.mulf %2, %3 : vector<1x1x256xf32>
    %5 = vector.broadcast %4 : vector<1x1x256xf32> to vector<1x4x256xf32>
    %6 = arith.subf %0, %5 : vector<1x4x256xf32>
    %7 = arith.mulf %6, %6 : vector<1x4x256xf32>
    %cst_3 = arith.constant dense<0.000000e+00> : vector<1x256xf32>
    %8 = vector.multi_reduction <add>, %7, %cst_3 [1] : vector<1x4x256xf32> to vector<1x256xf32>
    %9 = vector.shape_cast %8 : vector<1x256xf32> to vector<1x1x256xf32>
    %cst_4 = arith.constant 0.333333343 : f32
    %10 = vector.broadcast %cst_4 : f32 to vector<1x1x256xf32>
    %11 = arith.mulf %9, %10 : vector<1x1x256xf32>
    %cst_5 = arith.constant 0.000000e+00 : f32
    %12 = vector.broadcast %cst_5 : f32 to vector<1x1x256xf32>
    %13 = arith.maximumf %11, %12 : vector<1x1x256xf32>
    %14 = math.sqrt %13 : vector<1x1x256xf32>
    %c0_6 = arith.constant 0 : index
    %c0_7 = arith.constant 0 : index
    %c0_8 = arith.constant 0 : index
    %15 = vector.load %arg3[%c0_6, %c0_7, %c0_8] : memref<1x5x256xf32, #tpu.memory_space<vmem>>, vector<1x4x256xf32>
    tpu.vector_store %arg3[%c0_6, %c0_7, %c0_8], %0 {strides = array<i32>} : memref<1x5x256xf32, #tpu.memory_space<vmem>>, vector<1x4x256xf32>,
    %c0_9 = arith.constant 0 : index
    %c4 = arith.constant 4 : index
    %c0_10 = arith.constant 0 : index
    %16 = vector.load %arg3[%c0_9, %c4, %c0_10] : memref<1x5x256xf32, #tpu.memory_space<vmem>>, vector<1x1x256xf32>
    tpu.vector_store %arg3[%c0_9, %c4, %c0_10], %14 {strides = array<i32>} : memref<1x5x256xf32, #tpu.memory_space<vmem>>, vector<1x1x256xf32>,
    return
  }
  func.func @transform_0(%arg0: i32, %arg1: i32) -> (i32, i32, i32) {
    %c0_i32 = arith.constant 0 : i32
    %c0_i32_0 = arith.constant 0 : i32
    return %arg0, %c0_i32, %arg1 : i32, i32, i32
  }
  func.func @transform_1(%arg0: i32, %arg1: i32) -> (i32, i32, i32) {
    %c0_i32 = arith.constant 0 : i32
    %c0_i32_0 = arith.constant 0 : i32
    return %arg0, %c0_i32, %arg1 : i32, i32, i32
  }
}

</mosaic_0001>

<bundles_post_ra>
// kernel: tpu_custom_call.1
= control target key start
LH: loop header
LB: loop body
LE: loop exit
PB: predicated region body
PF: predicated region fallthrough
CT: control target
= control target key end

     0   :  { %6 = vsyncpa [#allocation3], 0  ;;  %s652_s0 = inlined_call_operand.hbm [shape: f32[2,4,256], index: 0, kind: input, shape index: {}]   ;;  %s653_s1 = inlined_call_operand.vmem [shape: f32[2,5,256], index: 1, kind: output, shape index: {}]  }
   0x1   :  { %8 = vsyncpa [#allocation3 + $0x1], 0  ;;  %s518_s6 = smov 0   ;;  %s520_s7 = smov 0  }
   0x2   :  { %s522_s8 = smov 0   ;;  %s524_s9 = smov 0  }
   0x3   :  { %s526_s10 = smov 0   ;;  %s528_s11 = smov 0  }
   0x4 LB: > { %s347_s12 = sadd.s32 4294967295, %s504_s11   ;;  %s26_s13 = sadd.s32 1, %s500_s10  ;;  %s504_s11 = sphi %s528_s11, %s14_s11   ;;  %s500_s10 = sphi %s526_s10, %s663_s10   ;;  %s496_s9 = sphi %s524_s9, %s662_s9   ;;  %s492_s8 = sphi %s522_s8, %s661_s8   ;;  %s488_s7 = sphi %s520_s7, %s660_s7   ;;  %s484_s6 = sphi %s518_s6, %s659_s6  }
   0x5   : > { %p28_p0 = scmp.ge.s32.totalorder %s26_s13, 2  ;;  %s35_s14 = sadd.s32 1, %s492_s8 }
   0x6   : > { %p42_p1 = scmp.ne.s32.totalorder %s492_s8, %s488_s7  ;;  %p43_p2 = scmp.eq.s32.totalorder %s504_s11, 0 }
   0x7   : > { %s665_s13 = smov (%p28_p0, %s26_s13), 0  ;;  %p48_p4 = scmp.ne.s32.totalorder %s488_s7, %s484_s6 }
   0x8   : > { %p554_p3 = por %p43_p2, %p42_p1  ;;  %s30_s16 = ssub.s32 %s500_s10, %s665_s13 }
   0x9   : > { %p49_p5 = scmp.eq.s32.totalorder %s347_s12, 0  ;;  %p33_p6 = scmp.eq.s32.totalorder %s30_s16, 0 }
   0xa   : > { %p369_p8 = scmp.lt.s32.totalorder %s504_s11, 2  ;;  %s100_s19 = sand.u32 1, %s492_s8  }
   0xb   : > { %p561_p7 = por %p49_p5, %p48_p4  ;;  %s361_s20 = sshll.u32 %s500_s10, 7 }
   0xc   : > { %s567_s18 = scalar_select %p33_p6, %s492_s8, %s35_s14  }
   0xd   : > { %s351_s21 = sshll.u32 %s100_s19, 3  ;;  %s574_s24 = scalar_lea.hbm %s652_s0, %s361_s20 }
   0xe   : > { %s104_s25 = scalar_lea.vmem [#allocation2], %s351_s21  ;;  %p578_p9 = pnand %p369_p8, %p554_p3 }
   0xf   : > { %s114_s26 = sshll.u32 %s104_s25, 4  ;;  %s101_s28 = scalar_lea.sflag [#allocation3], %s100_s19  ;;  %s582_s26 = int_to_ptr.vmem [resolvable:$true] %s114_s26 }
  0x10   : > { %s424_s29 = scalar_lea.hbm %s574_s24, 128  ;;  %p426_p13 = pneg %p578_p9 }
  0x11   : > { %p425_p12 = scmp.ne.s32.totalorder %s574_s24, %s424_s29  ;;  %s429_s3 = scalar_lea.hbm %s652_s0, 256 }
  0x12   : > { %p430_p2 = scmp.lt.u32.totalorder %s574_s24, %s652_s0  ;;  %p431_p3 = scmp.lt.u32.totalorder %s429_s3, %s424_s29 }
  0x13   : > { %p427_p0 = pnand %p426_p13, %p425_p12  ;;  %p433_p5 = scmp.lt.u32.totalorder %s424_s29, %s574_s24 }
  0x14   : > { %p432_p4 = por %p431_p3, %p430_p2 }
  0x15   : > { %p428_p1 = pneg %p427_p0 }
  0x16   : > { %p434_p6 = por %p433_p5, %p432_p4 }
  0x18   : > { %p435_p8 = pnand %p434_p6, %p428_p1 }
  0x1a   : > { %438 = shalt.err (!%p435_p8)
}
  0x1b   : > { %s439_s6 = scalar_lea.vmem %s582_s26, 128  ;;  %s506_s12 = smov [#allocation2]  }
  0x1c   : > { %p440_p12 = scmp.ne.s32.totalorder %s582_s26, %s439_s6  ;;  %s444_s14 = sshll.u32 %s506_s12, 4  ;;  %s445_s14 = int_to_ptr.vmem [resolvable:$false] %s444_s14 }
  0x1d   : > { %s446_s15 = scalar_lea.vmem %s445_s14, 256  ;;  %p447_p11 = scmp.lt.s32.totalorder %s582_s26, %s445_s14 }
  0x1e   : > { %p442_p0 = pnand %p440_p12, %p426_p13  ;;  %p448_p2 = scmp.lt.s32.totalorder %s446_s15, %s439_s6 }
  0x20   : > { %p443_p10 = pneg %p442_p0  ;;  %p449_p3 = por %p448_p2, %p447_p11 }
  0x22   : > { %p450_p4 = pnand %p449_p3, %p443_p10 }
  0x24   : > { %453 = shalt.err (!%p450_p4)
}
  0x25   : > { %368 = dma.hbm_to_vmem [thread:$0]  (!%p578_p9), %s574_s24, 128, %s582_s26, %s101_s28  }
  0x26   : > { %p657_p1 = scmp.lt.s32.totalorder %s504_s11, 3  ;;  %p658_p5 = scmp.ge.s32.totalorder %s504_s11, 1 }
  0x28   : > { %p120_p13 = pnand %p658_p5, %p657_p1 }
  0x29   : > { %s125_s16 = sand.u32 (!%p120_p13), 1, %s488_s7  }
  0x2a   : > { %123 = sbr.rel (%p120_p13) target bundleno = 115 (0x73), region = 24  ;;  %s355_s19 = sshll.u32 (!%p120_p13), %s125_s16, 3 }
  0x2b   : > { %s126_s20 = scalar_lea.sflag (!%p120_p13), [#allocation3], %s125_s16  ;;  %s129_s21 = scalar_lea.vmem (!%p120_p13), [#allocation2], %s355_s19 }
  0x31   : > { %479 = dma.done.wait (%p561_p7), %s126_s20, 128  }
  0x32   : > { %481 = vsyncadd (%p561_p7), %s126_s20, 4294967168  ;;  %p154_p10 = scmp.lt.s32.totalorder %s496_s9, 1  ;;  %vm167_vm0 = vcmask 1043456   ;;  %v163_v0 = vld [vmem:[%s129_s21] sm:$0xff]  ;;  %v507_v40 = vmov 1966171168   ;;  %v233_v42 = vlaneseq }
  0x33   : > { %v168_v1 = vsel %vm167_vm0, %v163_v0, 0.0  ;;  %v165_v2 = vcombine.high %v163_v0, %v163_v0  ;;  %v231_v41 = vunpack.c.l.s4 %v507_v40 }
  0x34   : > { %s667_s9 = smov (!%p154_p10, %s496_s9), 1  ;;  %v169_v3 = vrot.slane %v168_v1, 4  ;;  %v234_v47 = vshrl.u32 %v233_v42, 7  ;;  %vm247_vm5 = vcmp.lt.s32.totalorder %v233_v42, 256 }
  0x35   : > { %s362_s22 = sshll.u32 %s667_s9, 4  ;;  %v175_v4 = vsel %vm167_vm0, %v165_v2, 0.0  ;;  %v232_v46 = vunpack.c.0.s8 %v231_v41 }
  0x36   : > { %s625_s25 = scalar_lea.vmem %s653_s1, %s362_s22  ;;  %v170_v5 = vadd.f32 %v169_v3, %v168_v1  ;;  %v176_v6 = vrot.slane %v175_v4, 4 }
  0x37   : > { %225 = vst [vmem:[%s625_s25] sm:$0xf] %v163_v0  ;;  %226 = vst [vmem:[%s625_s25 + $0x8] sm:$0xf] %v165_v2  ;;  %v235_v54 = vsub.s32 %v232_v46, %v234_v47 }
  0x38   : > { %v171_v7 = vrot.slane %v170_v5, 2  ;;  %v177_v8 = vadd.f32 %v176_v6, %v175_v4 }
  0x3a   : > { %v172_v9 = vadd.f32 %v171_v7, %v170_v5  ;;  %v178_v10 = vrot.slane %v177_v8, 2 }
  0x3c   : > { %v173_v11 = vrot.slane %v172_v9, 1  ;;  %v179_v12 = vadd.f32 %v178_v10, %v177_v8 }
  0x3e   : > { %v174_v13 = vadd.f32 %v173_v11, %v172_v9  ;;  %v180_v14 = vrot.slane %v179_v12, 1 }
  0x40   : > { %v182_v15 = vmul.f32 0.25, %v174_v13  ;;  %v181_v16 = vadd.f32 %v180_v14, %v179_v12 }
  0x42   : > { %v183_v17 = vmul.f32 0.25, %v181_v16 }
  0x44   : > { %v186_v18 = vcombine.low %v182_v15, %v183_v17 }
  0x46   : > { %v188_v19 = vsub.f32 %v163_v0, %v186_v18 }
  0x48   : > { %v189_v20 = vmul.f32 %v188_v19, %v188_v19 }
  0x4a   : > { %v191_v21 = vcombine.high %v189_v20, %v189_v20  ;;  %v193_v22 = vsel %vm167_vm0, %v189_v20, 0.0 }
  0x4b   : > { %v194_v23 = vrot.slane %v193_v22, 4 }
  0x4c   : > { %v200_v24 = vsel %vm167_vm0, %v191_v21, 0.0 }
  0x4d   : > { %v195_v25 = vadd.f32 %v194_v23, %v193_v22  ;;  %v201_v26 = vrot.slane %v200_v24, 4 }
  0x4f   : > { %v196_v27 = vrot.slane %v195_v25, 2  ;;  %v202_v28 = vadd.f32 %v201_v26, %v200_v24 }
  0x51   : > { %v197_v29 = vadd.f32 %v196_v27, %v195_v25  ;;  %v203_v30 = vrot.slane %v202_v28, 2 }
  0x53   : > { %v198_v31 = vrot.slane %v197_v29, 1  ;;  %v204_v32 = vadd.f32 %v203_v30, %v202_v28 }
  0x55   : > { %v199_v33 = vadd.f32 %v198_v31, %v197_v29  ;;  %v205_v34 = vrot.slane %v204_v32, 1 }
  0x57   : > { %v206_v35 = vadd.f32 %v205_v34, %v204_v32  ;;  %v207_v36 = vmul.f32 0.33333334, %v199_v33 }
  0x59   : > { %v208_v37 = vmul.f32 0.33333334, %v206_v35  ;;  %v209_v38 = vmax.f32 %v207_v36, 0.0 }
  0x5b   : > { %v210_v39 = vmax.f32 %v208_v37, 0.0  ;;  %420 = vrsqrt.f32 %v209_v38  ;;  %vm213_vm1 = vcmp.eq.f32.partialorder %v209_v38, inf  ;;  %v216_v44 = vand.u32 2147483648, %v209_v38 }
  0x5c   : > { %vm215_vm2 = vcmp.eq.f32.partialorder %v209_v38, 0.0 }
  0x5d   : > { %422 = vrsqrt.f32 %v210_v39  ;;  %vm220_vm3 = vcmp.eq.f32.partialorder %v210_v39, inf  ;;  %v223_v49 = vand.u32 2147483648, %v210_v39  ;;  %vm222_vm4 = vcmp.eq.f32.partialorder %v210_v39, 0.0 }
  0x65   : > { %v421_v43 = vpop.eup %420 }
  0x66   : > { %v212_v45 = vmul.f32 %v421_v43, %v209_v38 }
  0x67   : > { %v423_v48 = vpop.eup %422 }
  0x68   : > { %v214_v50 = vsel %vm213_vm1, %v209_v38, %v212_v45  ;;  %v219_v51 = vmul.f32 %v423_v48, %v210_v39 }
  0x69   : > { %v217_v52 = vsel %vm215_vm2, %v216_v44, %v214_v50 }
  0x6a   : > { %v221_v53 = vsel %vm220_vm3, %v210_v39, %v219_v51 }
  0x6b   : > { %v224_v55 = vsel %vm222_vm4, %v223_v49, %v221_v53 }
  0x6c   : > { %v229_v56 = vcombine.low %v217_v52, %v224_v55 }
  0x6e   : > { %v236_v57 = vrot.slane %v229_v56, %v235_v54 }
  0x70   : > { %v243_v58 = vrot.slane %v236_v57, %v235_v54 }
  0x72   : > { %358 = vst.msk [vmem:[%s625_s25 + $0x4] ss:$8 sm:$0x3] %vm247_vm5, %v243_v58 }
  0x73 PF: > { %s14_s11 = sadd.s32 1, %s504_s11   ;;  %s659_s6 = smov %s488_s7 }
  0x74   : > { %p11_p7 = scmp.ge.s32.totalorder %s14_s11, 4   ;;  %s660_s7 = smov %s492_s8 }
  0x75   : > { %s661_s8 = smov %s567_s18  ;;  %s662_s9 = smov %s500_s10 }
  0x76   : > { %s663_s10 = smov %s665_s13  ;;  %13 = sbr.rel (!%p11_p7) target bundleno = 4 (0x4), region = 65 }
  0x7d   :  { %282 = vsyncpa [#allocation3], 1 }
  0x7e   :  { %284 = vsyncpa [#allocation3 + $0x1], 1 }

</bundles_post_ra>
